<compile_context>
chip_gen: v6e
topology: v6e:2x2x1
jax: 0.10.0
libtpu: 0.0.40
codegen_flags: <defaults>
</compile_context>

<pallas_src>
import functools

import jax
import jax.numpy as jnp
from jax.experimental import pallas as pl
from jax.experimental.pallas import tpu as pltpu


def _copy_kernel(x_ref, o_ref):
    # Straight element copy of the current (tile_rows, lanes) block.
    o_ref[...] = x_ref[...]


def _round_up(n: int, m: int) -> int:
    return ((n + m - 1) // m) * m


_LANE_CANDIDATES = (2048, 1024, 512, 256, 128)
# ~1 MiB per block buffer; with double-buffered input + output that is ~4 MiB of VMEM,
# comfortably inside every generation's default scoped-VMEM limit.
_TARGET_BLOCK_BYTES = 1 << 20


@functools.partial(jax.jit, static_argnames=("shape",))
def flatten_forward(x: jnp.ndarray, shape) -> jnp.ndarray:
    """Reproduces Flatten.forward: x.view(out_shape) with shape[0] == -1
    meaning "keep batch dim"."""
    out_shape = (x.shape[0] if shape[0] == -1 else shape[0],) + tuple(shape[1:])

    total = x.size
    itemsize = jnp.dtype(x.dtype).itemsize

    # Lane-dense slab: lanes is a large multiple of 128 so every store is a full,
    # unmasked vst and every vreg is fully populated.
    lanes = next((l for l in _LANE_CANDIDATES if total % l == 0), 0)
    flat = x.reshape(total)
    if lanes == 0:
        # Ragged total (not a multiple of 128): pad up to a lane multiple (rare path),
        # the pad is sliced off again below.
        lanes = 1024
        padded_total = _round_up(total, lanes)
        flat = jnp.pad(flat, (0, padded_total - total))
    padded_total = flat.size
    rows = padded_total // lanes
    slab = flat.reshape(rows, lanes)

    # Row-tile sized for ~1 MiB blocks, rows a multiple of 8 sublanes; never a
    # whole-array giant block (keeps the pipeline alive and VMEM bounded).
    if rows < 8:
        tile_rows = rows  # full-dim block (second-to-last == array dim) is always legal
    else:
        cand = max(8, (_TARGET_BLOCK_BYTES // (lanes * itemsize)) // 8 * 8)
        tile_rows = min(cand, (rows // 8) * 8)
    grid = (pl.cdiv(rows, tile_rows),)

    y_slab = pl.pallas_call(
        _copy_kernel,
        out_shape=jax.ShapeDtypeStruct((rows, lanes), x.dtype),
        grid_spec=pltpu.PrefetchScalarGridSpec(
            num_scalar_prefetch=0,
            grid=grid,
            in_specs=[pl.BlockSpec((tile_rows, lanes), lambda i: (i, 0))],
            out_specs=pl.BlockSpec((tile_rows, lanes), lambda i: (i, 0)),
        ),
        compiler_params=pltpu.CompilerParams(
            # Independent row tiles: lets v7x shard the copy across both TensorCores;
            # neutral on the single-TC v5e/v6e.
            dimension_semantics=("parallel",),
        ),
        # Alias output onto input: no separate output allocation, in-place writeback.
        input_output_aliases={0: 0},
        cost_estimate=pl.CostEstimate(
            flops=0, transcendentals=0, bytes_accessed=2 * total * itemsize
        ),
    )(slab)

    y_flat = y_slab.reshape(padded_total)
    if padded_total != total:
        y_flat = y_flat[:total]
    # Metadata-only reshape to the requested output shape (torch .view semantics).
    return y_flat.reshape(out_shape)


if __name__ == "__main__":
    key = jax.random.PRNGKey(0)
    B, C, H, W = 2, 4, 16, 16
    x = jax.random.normal(key, (B, C, H, W), dtype=jnp.float32)

    # Flatten(shape=(-1, C*H*W)) — the typical use in ucsgnet extractors.
    target_shape = (-1, C * H * W)
    y = flatten_forward(x, target_shape)
    y = jax.block_until_ready(y)

    # Reference check: identical to a plain reshape (torch .view semantics).
    ref = x.reshape((B, C * H * W))
    assert y.shape == ref.shape, (y.shape, ref.shape)
    assert y.dtype == ref.dtype
    assert bool(jnp.array_equal(y, ref))

    print("KERNEL_OK")
</pallas_src>

<mosaic_0001>
module attributes {stable_mosaic.version = 11 : i64} {
  func.func @_copy_kernel(%arg0: i32, %arg1: memref<1x2048xf32, #tpu.memory_space<vmem>>, %arg2: memref<1x2048xf32, #tpu.memory_space<vmem>>) attributes {dimension_semantics = [#tpu.dimension_semantics<parallel>], iteration_bounds = array<i64: 1>, scalar_prefetch = 0 : i64, scratch_operands = 0 : i64, tpu.core_type = #tpu.core_type<tc>, window_params = [{transform_indices = @transform_0, window_bounds = array<i64: 1, 2048>}, {transform_indices = @transform_1, window_bounds = array<i64: 1, 2048>}]} {
    %c0 = arith.constant 0 : index
    %c0_0 = arith.constant 0 : index
    %0 = vector.load %arg1[%c0, %c0_0] : memref<1x2048xf32, #tpu.memory_space<vmem>>, vector<1x2048xf32>
    %c0_1 = arith.constant 0 : index
    %c0_2 = arith.constant 0 : index
    %1 = vector.load %arg2[%c0_1, %c0_2] : memref<1x2048xf32, #tpu.memory_space<vmem>>, vector<1x2048xf32>
    tpu.vector_store %arg2[%c0_1, %c0_2], %0 {strides = array<i32>} : memref<1x2048xf32, #tpu.memory_space<vmem>>, vector<1x2048xf32>,
    return
  }
  func.func @transform_0(%arg0: i32) -> (i32, i32) {
    %c0_i32 = arith.constant 0 : i32
    %c0_i32_0 = arith.constant 0 : i32
    return %arg0, %c0_i32 : i32, i32
  }
  func.func @transform_1(%arg0: i32) -> (i32, i32) {
    %c0_i32 = arith.constant 0 : i32
    %c0_i32_0 = arith.constant 0 : i32
    return %arg0, %c0_i32 : i32, i32
  }
}

</mosaic_0001>

<bundles_post_ra>
// kernel: flatten_forward.1
= control target key start
LH: loop header
LB: loop body
LE: loop exit
PB: predicated region body
PF: predicated region fallthrough
CT: control target
= control target key end

     0   :  { %s38_s0 = inlined_call_operand.vmem [shape: f32[1,2048], index: 0, kind: input, shape index: {}, may-alias: {0,1}]   ;;  %s39_s1 = inlined_call_operand.vmem [shape: f32[1,2048], index: 1, kind: output, shape index: {}, may-alias: {0,1}]  }
   0x1   :  { %v8_v0 = vld [vmem:[%s38_s0] sm:$0xff]  ;;  %v9_v1 = vld [vmem:[%s38_s0 + $0x8] sm:$0xff] }
   0x2   :  { %10 = vst [vmem:[%s39_s1] sm:$0xff] %v8_v0  ;;  %11 = vst [vmem:[%s39_s1 + $0x8] sm:$0xff] %v9_v1 }

</bundles_post_ra>
